<compile_context>
chip_gen: v5e
topology: v5e:2x2
jax: 0.10.0
libtpu: 0.0.40
codegen_flags: <defaults>
</compile_context>

<pallas_src>
import functools

import jax
import jax.numpy as jnp
from jax.experimental import pallas as pl
from jax.experimental.pallas import tpu as pltpu

HIDDEN = 256


def softq_kernel(xa_ref, w1_ref, w2_ref, w3_ref, b_ref, out_ref):
    # MXU operands in bf16; accumulation + elementwise epilogues in f32.
    xa = xa_ref[...].astype(jnp.bfloat16)                            # [TM, in_dim]

    # fc1 + relu  (merged cat([x, a]) @ W1)
    h1 = jnp.dot(xa, w1_ref[...], preferred_element_type=jnp.float32)
    h1 = jnp.maximum(h1 + b_ref[0:1, :], 0.0).astype(jnp.bfloat16)   # [TM, 256] bf16

    # fc2 + relu
    h2 = jnp.dot(h1, w2_ref[...], preferred_element_type=jnp.float32)
    h2 = jnp.maximum(h2 + b_ref[1:2, :], 0.0)                        # [TM, 256] f32

    # fc3 on the VPU (mul) + XLU (lane reduction), f32 weights/accumulation.
    q = jnp.sum(h2 * w3_ref[...], axis=-1, keepdims=True)            # [TM, 1] f32
    out_ref[...] = q + b_ref[2:3, 0:1]


def _round_up(n, m):
    return ((n + m - 1) // m) * m


def _pick_tile(batch, tile_m):
    """Batch tile (multiple of 8) with minimal tail padding; for batches
    >= 256 keep at least 2 grid steps (v7x dual-TensorCore sharding)."""
    b8 = _round_up(batch, 8)
    tm = min(_round_up(tile_m, 8), b8)
    if b8 > tm:
        nsteps = -(-b8 // tm)
        tm = _round_up(-(-b8 // nsteps), 8)     # rebalance -> minimal tail pad
    elif batch >= 256:
        tm = _round_up(-(-b8 // 2), 8)          # single big tile: split for 2 TCs
    b_pad = _round_up(b8, tm)
    return tm, b_pad


@functools.partial(jax.jit, static_argnames=("tile_m",))
def softq_forward(x, a, kparams, *, tile_m=512):
    """x: [B, obs_dim] f32, a: [B, act_dim] f32 -> q: [B, 1] f32."""
    B = x.shape[0]
    xa = jnp.concatenate([x, a], axis=1)        # torch.cat([x, a], 1)
    in_dim = xa.shape[1]

    tm, b_pad = _pick_tile(B, tile_m)
    if b_pad != B:
        xa = jnp.pad(xa, ((0, b_pad - B), (0, 0)))

    out = pl.pallas_call(
        softq_kernel,
        out_shape=jax.ShapeDtypeStruct((b_pad, 1), jnp.float32),
        grid_spec=pltpu.PrefetchScalarGridSpec(
            num_scalar_prefetch=0,
            grid=(b_pad // tm,),
            in_specs=[
                pl.BlockSpec((tm, in_dim), lambda i: (i, 0)),        # [x|a] tile
                pl.BlockSpec((in_dim, HIDDEN), lambda i: (0, 0)),    # W1 (bf16)
                pl.BlockSpec((HIDDEN, HIDDEN), lambda i: (0, 0)),    # W2 (bf16)
                pl.BlockSpec((1, HIDDEN), lambda i: (0, 0)),         # W3 row (f32)
                pl.BlockSpec((8, HIDDEN), lambda i: (0, 0)),         # packed biases
            ],
            out_specs=pl.BlockSpec((tm, 1), lambda i: (i, 0)),
        ),
        compiler_params=pltpu.CompilerParams(
            dimension_semantics=("parallel",),
            vmem_limit_bytes=(32 * 1024 * 1024 if tm >= 1024 else None)),
    )(xa, kparams["w1"], kparams["w2"], kparams["w3"], kparams["bias"])

    return out[:B]


def init_params(key, obs_dim, act_dim):
    """PyTorch nn.Linear-style uniform init; weights stored as [in, out] f32."""
    ks = jax.random.split(key, 6)

    def lin(kw, kb, fan_in, fan_out):
        bound = 1.0 / jnp.sqrt(fan_in)
        w = jax.random.uniform(kw, (fan_in, fan_out), jnp.float32, -bound, bound)
        b = jax.random.uniform(kb, (1, fan_out), jnp.float32, -bound, bound)
        return w, b

    w1, b1 = lin(ks[0], ks[1], obs_dim + act_dim, HIDDEN)
    w2, b2 = lin(ks[2], ks[3], HIDDEN, HIDDEN)
    w3, b3 = lin(ks[4], ks[5], HIDDEN, 1)
    return dict(w1=w1, b1=b1, w2=w2, b2=b2, w3=w3, b3=b3)


def pack_params(p):
    """Kernel-ready params: bf16 hidden weights, f32 head row, packed f32 biases."""
    bias = jnp.zeros((8, HIDDEN), jnp.float32)
    bias = bias.at[0, :].set(p["b1"][0])
    bias = bias.at[1, :].set(p["b2"][0])
    bias = bias.at[2, 0].set(p["b3"][0, 0])
    return dict(
        w1=p["w1"].astype(jnp.bfloat16),          # (obs+act, 256)
        w2=p["w2"].astype(jnp.bfloat16),          # (256, 256)
        w3=p["w3"].reshape(1, HIDDEN),            # (1, 256) f32 head weights
        bias=bias,                                # (8, 256) f32
    )


def reference_forward(x, a, p):
    xa = jnp.concatenate([x, a], axis=1)
    h1 = jax.nn.relu(xa @ p["w1"] + p["b1"])
    h2 = jax.nn.relu(h1 @ p["w2"] + p["b2"])
    return h2 @ p["w3"] + p["b3"]


if __name__ == "__main__":
    # Small SAC-style shapes: batch=8, obs_dim=8, act_dim=4.
    batch, obs_dim, act_dim = 8, 8, 4

    key = jax.random.PRNGKey(0)
    k_x, k_a, k_p = jax.random.split(key, 3)
    x = jax.random.normal(k_x, (batch, obs_dim), jnp.float32)
    a = jax.random.normal(k_a, (batch, act_dim), jnp.float32)

    params = init_params(k_p, obs_dim, act_dim)    # f32 ground truth
    kparams = pack_params(params)                  # kernel-ready params

    q = jax.block_until_ready(softq_forward(x, a, kparams))

    # Correctness vs. pure-f32 JAX reference (tolerance loosened because the
    # fc1/fc2 matmul operands are bf16; the head is exact f32).
    q_ref = reference_forward(x, a, params)
    assert q.shape == (batch, 1)
    assert jnp.allclose(q, q_ref, atol=2e-2, rtol=2e-2), (
        float(jnp.max(jnp.abs(q - q_ref))))

    print("KERNEL_OK")
</pallas_src>

<mosaic_0001>
module attributes {stable_mosaic.version = 11 : i64} {
  func.func @softq_kernel(%arg0: i32, %arg1: memref<8x12xf32, #tpu.memory_space<vmem>>, %arg2: memref<12x256xbf16, #tpu.memory_space<vmem>>, %arg3: memref<256x256xbf16, #tpu.memory_space<vmem>>, %arg4: memref<1x256xf32, #tpu.memory_space<vmem>>, %arg5: memref<8x256xf32, #tpu.memory_space<vmem>>, %arg6: memref<8x1xf32, #tpu.memory_space<vmem>>) attributes {dimension_semantics = [#tpu.dimension_semantics<parallel>], iteration_bounds = array<i64: 1>, scalar_prefetch = 0 : i64, scratch_operands = 0 : i64, tpu.core_type = #tpu.core_type<tc>, window_params = [{transform_indices = @transform_0, window_bounds = array<i64: 8, 12>}, {pipeline_mode = #tpu.pipeline_mode<synchronous>, transform_indices = @transform_1, window_bounds = array<i64: 12, 256>}, {pipeline_mode = #tpu.pipeline_mode<synchronous>, transform_indices = @transform_2, window_bounds = array<i64: 256, 256>}, {pipeline_mode = #tpu.pipeline_mode<synchronous>, transform_indices = @transform_3, window_bounds = array<i64: 1, 256>}, {pipeline_mode = #tpu.pipeline_mode<synchronous>, transform_indices = @transform_4, window_bounds = array<i64: 8, 256>}, {transform_indices = @transform_5, window_bounds = array<i64: 8, 1>}]} {
    %c0 = arith.constant 0 : index
    %c0_0 = arith.constant 0 : index
    %0 = vector.load %arg1[%c0, %c0_0] : memref<8x12xf32, #tpu.memory_space<vmem>>, vector<8x12xf32>
    %1 = arith.truncf %0 : vector<8x12xf32> to vector<8x12xbf16>
    %c0_1 = arith.constant 0 : index
    %c0_2 = arith.constant 0 : index
    %2 = vector.load %arg2[%c0_1, %c0_2] : memref<12x256xbf16, #tpu.memory_space<vmem>>, vector<12x256xbf16>
    %cst = arith.constant dense<0.000000e+00> : vector<8x256xf32>
    %3 = tpu.matmul %1, %2, %cst {dimension_numbers = #tpu.dot_dimension_numbers<[1], [0], [0], [1], [0, 0, 1, 1], [], []>} : vector<8x12xbf16>, vector<12x256xbf16>, vector<8x256xf32> -> vector<8x256xf32>
    %c0_3 = arith.constant 0 : index
    %c0_4 = arith.constant 0 : index
    %4 = vector.load %arg5[%c0_3, %c0_4] : memref<8x256xf32, #tpu.memory_space<vmem>>, vector<1x256xf32>
    %5 = vector.broadcast %4 : vector<1x256xf32> to vector<8x256xf32>
    %6 = arith.addf %3, %5 : vector<8x256xf32>
    %cst_5 = arith.constant 0.000000e+00 : f32
    %7 = vector.broadcast %cst_5 : f32 to vector<8x256xf32>
    %8 = arith.maximumf %6, %7 : vector<8x256xf32>
    %9 = arith.truncf %8 : vector<8x256xf32> to vector<8x256xbf16>
    %c0_6 = arith.constant 0 : index
    %c0_7 = arith.constant 0 : index
    %10 = vector.load %arg3[%c0_6, %c0_7] : memref<256x256xbf16, #tpu.memory_space<vmem>>, vector<256x256xbf16>
    %cst_8 = arith.constant dense<0.000000e+00> : vector<8x256xf32>
    %11 = tpu.matmul %9, %10, %cst_8 {dimension_numbers = #tpu.dot_dimension_numbers<[1], [0], [0], [1], [0, 0, 1, 1], [], []>} : vector<8x256xbf16>, vector<256x256xbf16>, vector<8x256xf32> -> vector<8x256xf32>
    %c1 = arith.constant 1 : index
    %c0_9 = arith.constant 0 : index
    %12 = vector.load %arg5[%c1, %c0_9] : memref<8x256xf32, #tpu.memory_space<vmem>>, vector<1x256xf32>
    %13 = vector.broadcast %12 : vector<1x256xf32> to vector<8x256xf32>
    %14 = arith.addf %11, %13 : vector<8x256xf32>
    %cst_10 = arith.constant 0.000000e+00 : f32
    %15 = vector.broadcast %cst_10 : f32 to vector<8x256xf32>
    %16 = arith.maximumf %14, %15 : vector<8x256xf32>
    %c0_11 = arith.constant 0 : index
    %c0_12 = arith.constant 0 : index
    %17 = vector.load %arg4[%c0_11, %c0_12] : memref<1x256xf32, #tpu.memory_space<vmem>>, vector<1x256xf32>
    %18 = vector.broadcast %17 : vector<1x256xf32> to vector<8x256xf32>
    %19 = arith.mulf %16, %18 : vector<8x256xf32>
    %cst_13 = arith.constant dense<0.000000e+00> : vector<8xf32>
    %20 = vector.multi_reduction <add>, %19, %cst_13 [1] : vector<8x256xf32> to vector<8xf32>
    %21 = vector.shape_cast %20 : vector<8xf32> to vector<8x1xf32>
    %c2 = arith.constant 2 : index
    %c0_14 = arith.constant 0 : index
    %22 = vector.load %arg5[%c2, %c0_14] : memref<8x256xf32, #tpu.memory_space<vmem>>, vector<1x1xf32>
    %23 = vector.broadcast %22 : vector<1x1xf32> to vector<8x1xf32>
    %24 = arith.addf %21, %23 : vector<8x1xf32>
    %c0_15 = arith.constant 0 : index
    %c0_16 = arith.constant 0 : index
    %25 = vector.load %arg6[%c0_15, %c0_16] : memref<8x1xf32, #tpu.memory_space<vmem>>, vector<8x1xf32>
    tpu.vector_store %arg6[%c0_15, %c0_16], %24 {strides = array<i32>} : memref<8x1xf32, #tpu.memory_space<vmem>>, vector<8x1xf32>,
    return
  }
  func.func @transform_0(%arg0: i32) -> (i32, i32) {
    %c0_i32 = arith.constant 0 : i32
    %c0_i32_0 = arith.constant 0 : i32
    return %arg0, %c0_i32 : i32, i32
  }
  func.func @transform_1(%arg0: i32) -> (i32, i32) {
    %c0_i32 = arith.constant 0 : i32
    %c0_i32_0 = arith.constant 0 : i32
    %c0_i32_1 = arith.constant 0 : i32
    return %c0_i32, %c0_i32_0 : i32, i32
  }
  func.func @transform_2(%arg0: i32) -> (i32, i32) {
    %c0_i32 = arith.constant 0 : i32
    %c0_i32_0 = arith.constant 0 : i32
    %c0_i32_1 = arith.constant 0 : i32
    return %c0_i32, %c0_i32_0 : i32, i32
  }
  func.func @transform_3(%arg0: i32) -> (i32, i32) {
    %c0_i32 = arith.constant 0 : i32
    %c0_i32_0 = arith.constant 0 : i32
    %c0_i32_1 = arith.constant 0 : i32
    return %c0_i32, %c0_i32_0 : i32, i32
  }
  func.func @transform_4(%arg0: i32) -> (i32, i32) {
    %c0_i32 = arith.constant 0 : i32
    %c0_i32_0 = arith.constant 0 : i32
    %c0_i32_1 = arith.constant 0 : i32
    return %c0_i32, %c0_i32_0 : i32, i32
  }
  func.func @transform_5(%arg0: i32) -> (i32, i32) {
    %c0_i32 = arith.constant 0 : i32
    %c0_i32_0 = arith.constant 0 : i32
    return %arg0, %c0_i32 : i32, i32
  }
}

</mosaic_0001>

<bundles_post_ra>
// kernel: softq_forward.1
= control target key start
LH: loop header
LB: loop body
LE: loop exit
PB: predicated region body
PF: predicated region fallthrough
CT: control target
= control target key end

     0   :  { %10 = vsyncpa [#allocation3], 0  ;;  %s677_s0 = inlined_call_operand.vmem [shape: f32[8,12], index: 0, kind: input, shape index: {}]   ;;  %s678_s1 = inlined_call_operand.vmem [shape: bf16[12,256], index: 1, kind: input, shape index: {}]   ;;  %s679_s2 = inlined_call_operand.hbm [shape: bf16[256,256], index: 2, kind: input, shape index: {}]   ;;  %s680_s3 = inlined_call_operand.vmem [shape: f32[1,256], index: 3, kind: input, shape index: {}]   ;;  %s681_s4 = inlined_call_operand.hbm [shape: f32[8,256], index: 4, kind: input, shape index: {}]   ;;  %s682_s5 = inlined_call_operand.vmem [shape: f32[8,1], index: 5, kind: output, shape index: {}]  }
   0x1   :  { %s20_s20 = sshll.u32 %s679_s2, 4  ;;  %s21_s20 = int_to_ptr.hbm [resolvable:$true] %s20_s20 }
   0x2   :  { %11 = vsyncpa [#allocation5], 0  ;;  %s612_s21 = smov [#allocation2]   ;;  %s36_s25 = sshll.u32 %s681_s4, 4  ;;  %s37_s25 = int_to_ptr.hbm [resolvable:$true] %s36_s25 }
   0x3   :  { %s22_s22 = sshll.u32 %s612_s21, 4  ;;  %s613_s26 = smov 128   ;;  %s23_s22 = int_to_ptr.vmem [resolvable:$true] %s22_s22 }
   0x4   :  { %s614_s27 = smov 8   ;;  %s615_s28 = smov [#allocation4]  }
   0x5   :  { %28 = dma.hbm_to_vmem [thread:$0]  %s21_s20, 4096, %s23_s22, [#allocation3], %s613_s26, %s613_s26, %s614_s27  }
   0x6   :  { %s38_s29 = sshll.u32 %s615_s28, 4  ;;  %s39_s29 = int_to_ptr.vmem [resolvable:$true] %s38_s29 }
   0x7   :  { %41 = dma.hbm_to_vmem [thread:$0]  %s37_s25, 256, %s39_s29, [#allocation5]  }
   0x8   :  { %608 = dma.done.wait [#allocation3], 4096  }
   0x9   :  { %609 = vsyncadd [#allocation3], 4294963200 }
   0xa   :  { %610 = dma.done.wait [#allocation5], 256  }
   0xb   :  { %611 = vsyncadd [#allocation5], 4294967040  ;;  %vm73_vm0 = vcmask 1045504   ;;  %v386_v0 = vld [vmem:[%s678_s1] sm:$0xf]  ;;  %vm69_vm1 = vcmask 97280  }
   0xc   :  { %v523_v1 = vld [vmem:[%s678_s1 + $0x4] sm:$0x30]  ;;  %v522_v2 = vld [vmem:[%s678_s1 + $0x4] sm:$0xf]  ;;  %v388_v4 = vld [vmem:[%s678_s1 + $0x8] sm:$0x30] }
   0xd   :  { %v387_v3 = vor.u32 %v523_v1, %v386_v0  ;;  %v51_v5 = vld [vmem:[%s677_s0] sm:$0xff]  ;;  %v452_v6 = vld [vmem:[#allocation2 + $0x70] sm:$0xf]  ;;  %v391_v7 = vor.u32 %v522_v2, %v388_v4  ;;  %v539_v8 = vld [vmem:[#allocation2 + $0x74] sm:$0xf0]  ;;  %vm376_vm2 = vcmask 7168  }
   0xe   :  { %v516_v9 = vld [vmem:[#allocation2 + $0xf0] sm:$0xf]  ;;  %v555_v10 = vld [vmem:[#allocation2 + $0xf4] sm:$0xf0]  ;;  %v52_v12 = vpack.c.bf16 %v51_v5, %v51_v5  ;;  %v453_v13 = vor.u32 %v539_v8, %v452_v6  ;;  %v538_v15 = vld [vmem:[#allocation2 + $0x74] sm:$0xf] }
   0xf   :  { %v75_v11 = vsel %vm73_vm0, %v387_v3, 0  ;;  %v517_v14 = vor.u32 %v555_v10, %v516_v9  ;;  %v454_v16 = vld [vmem:[#allocation2 + $0x78] sm:$0xf0]  ;;  %v78_v17 = vsel %vm73_vm0, %v391_v7, 0  ;;  %v554_v19 = vld [vmem:[#allocation2 + $0xf4] sm:$0xf] }
  0x10   :  { %87 = vmatpush.bf16.msra.mxu0 %v75_v11  ;;  %v457_v18 = vor.u32 %v538_v15, %v454_v16  ;;  %v518_v20 = vld [vmem:[#allocation2 + $0xf8] sm:$0xf0]  ;;  %100 = vmatpush.bf16.msra.mxu1 %v78_v17  ;;  %v444_v22 = vld [vmem:[#allocation2 + $0x60] sm:$0xf]  ;;  %v537_v23 = vld [vmem:[#allocation2 + $0x64] sm:$0xf0] }
  0x11   :  { %309 = vmatpush.bf16.msra.mxu2 %v453_v13  ;;  %v521_v21 = vor.u32 %v554_v19, %v518_v20  ;;  %v508_v24 = vld [vmem:[#allocation2 + $0xe0] sm:$0xf]  ;;  %322 = vmatpush.bf16.msra.mxu3 %v517_v14  ;;  %v445_v25 = vor.u32 %v537_v23, %v444_v22  ;;  %v553_v26 = vld [vmem:[#allocation2 + $0xe4] sm:$0xf0]  ;;  %v536_v27 = vld [vmem:[#allocation2 + $0x64] sm:$0xf] }
  0x12   :  { %v446_v28 = vld [vmem:[#allocation2 + $0x68] sm:$0xf0]  ;;  %v509_v29 = vor.u32 %v553_v26, %v508_v24  ;;  %v552_v31 = vld [vmem:[#allocation2 + $0xe4] sm:$0xf]  ;;  %v436_v33 = vld [vmem:[#allocation2 + $0x50] sm:$0xf] }
  0x13   :  { %392 = vmatmul.msk.bf16.vlgmr.msra.gmra.mxu0 %vm69_vm1, %v52_v12  ;;  %v449_v30 = vor.u32 %v536_v27, %v446_v28  ;;  %v510_v32 = vld [vmem:[#allocation2 + $0xe8] sm:$0xf0]  ;;  %393 = vmatmul.msk.bf16.vlgmr.msra.gmra.mxu1 %vm69_vm1, %v52_v12  ;;  %v535_v35 = vld [vmem:[#allocation2 + $0x54] sm:$0xf0]  ;;  %v500_v36 = vld [vmem:[#allocation2 + $0xd0] sm:$0xf] }
  0x14   :  { %335 = vmatpush.bf16.msrb.mxu0 %v457_v18  ;;  %348 = vmatpush.bf16.msrb.mxu1 %v521_v21  ;;  %v513_v34 = vor.u32 %v552_v31, %v510_v32  ;;  %v551_v37 = vld [vmem:[#allocation2 + $0xd4] sm:$0xf0]  ;;  %v437_v38 = vor.u32 %v535_v35, %v436_v33  ;;  %v534_v39 = vld [vmem:[#allocation2 + $0x54] sm:$0xf]  ;;  %v438_v40 = vld [vmem:[#allocation2 + $0x58] sm:$0xf0] }
  0x15   :  { %310 = vmatpush.bf16.msra.mxu2 %v445_v25  ;;  %v550_v41 = vld [vmem:[#allocation2 + $0xd4] sm:$0xf]  ;;  %323 = vmatpush.bf16.msra.mxu3 %v509_v29  ;;  %v501_v42 = vor.u32 %v551_v37, %v500_v36  ;;  %v441_v43 = vor.u32 %v534_v39, %v438_v40  ;;  %v502_v44 = vld [vmem:[#allocation2 + $0xd8] sm:$0xf0]  ;;  %v428_v45 = vld [vmem:[#allocation2 + $0x40] sm:$0xf] }
  0x16   :  { %v533_v46 = vld [vmem:[#allocation2 + $0x44] sm:$0xf0]  ;;  %v505_v47 = vor.u32 %v550_v41, %v502_v44  ;;  %v492_v48 = vld [vmem:[#allocation2 + $0xc0] sm:$0xf]  ;;  %v532_v50 = vld [vmem:[#allocation2 + $0x44] sm:$0xf] }
  0x17   :  { %v549_v49 = vld [vmem:[#allocation2 + $0xc4] sm:$0xf0]  ;;  %v430_v51 = vld [vmem:[#allocation2 + $0x48] sm:$0xf0]  ;;  %v548_v52 = vld [vmem:[#allocation2 + $0xc4] sm:$0xf]  ;;  %v429_v54 = vor.u32 %v533_v46, %v428_v45 }
  0x18   :  { %336 = vmatpush.bf16.msrb.mxu0 %v449_v30  ;;  %349 = vmatpush.bf16.msrb.mxu1 %v513_v34  ;;  %v494_v53 = vld [vmem:[#allocation2 + $0xc8] sm:$0xf0]  ;;  %v493_v55 = vor.u32 %v549_v49, %v492_v48  ;;  %v433_v56 = vor.u32 %v532_v50, %v430_v51  ;;  %v420_v57 = vld [vmem:[#allocation2 + $0x30] sm:$0xf]  ;;  %v531_v58 = vld [vmem:[#allocation2 + $0x34] sm:$0xf0] }
  0x19   :  { %311 = vmatpush.bf16.msra.mxu2 %v437_v38  ;;  %324 = vmatpush.bf16.msra.mxu3 %v501_v42  ;;  %v484_v59 = vld [vmem:[#allocation2 + $0xb0] sm:$0xf]  ;;  %v497_v60 = vor.u32 %v548_v52, %v494_v53  ;;  %v547_v61 = vld [vmem:[#allocation2 + $0xb4] sm:$0xf0]  ;;  %v530_v62 = vld [vmem:[#allocation2 + $0x34] sm:$0xf]  ;;  %v421_v2 = vor.u32 %v531_v58, %v420_v57 }
  0x1a   :  { %v422_v63 = vld [vmem:[#allocation2 + $0x38] sm:$0xf0]  ;;  %v546_v0 = vld [vmem:[#allocation2 + $0xb4] sm:$0xf]  ;;  %v485_v3 = vor.u32 %v547_v61, %v484_v59  ;;  %v412_v5 = vld [vmem:[#allocation2 + $0x20] sm:$0xf] }
  0x1b   :  { %v486_v1 = vld [vmem:[#allocation2 + $0xb8] sm:$0xf0]  ;;  %v425_v4 = vor.u32 %v530_v62, %v422_v63  ;;  %v529_v6 = vld [vmem:[#allocation2 + $0x24] sm:$0xf0]  ;;  %v476_v7 = vld [vmem:[#allocation2 + $0xa0] sm:$0xf] }
  0x1c   :  { %337 = vmatpush.bf16.msrb.mxu0 %v441_v43  ;;  %350 = vmatpush.bf16.msrb.mxu1 %v505_v47  ;;  %v489_v8 = vor.u32 %v546_v0, %v486_v1  ;;  %v545_v9 = vld [vmem:[#allocation2 + $0xa4] sm:$0xf0]  ;;  %v528_v10 = vld [vmem:[#allocation2 + $0x24] sm:$0xf]  ;;  %v414_v11 = vld [vmem:[#allocation2 + $0x28] sm:$0xf0]  ;;  %v413_v14 = vor.u32 %v529_v6, %v412_v5 }
  0x1d   :  { %312 = vmatpush.bf16.msra.mxu2 %v429_v54  ;;  %325 = vmatpush.bf16.msra.mxu3 %v493_v55  ;;  %v544_v12 = vld [vmem:[#allocation2 + $0xa4] sm:$0xf]  ;;  %v478_v13 = vld [vmem:[#allocation2 + $0xa8] sm:$0xf0]  ;;  %v477_v15 = vor.u32 %v545_v9, %v476_v7  ;;  %v417_v16 = vor.u32 %v528_v10, %v414_v11  ;;  %v404_v18 = vld [vmem:[#allocation2 + $0x10] sm:$0xf] }
  0x1e   :  { %v481_v17 = vor.u32 %v544_v12, %v478_v13  ;;  %v527_v19 = vld [vmem:[#allocation2 + $0x14] sm:$0xf0]  ;;  %v468_v20 = vld [vmem:[#allocation2 + $0x90] sm:$0xf]  ;;  %v526_v23 = vld [vmem:[#allocation2 + $0x14] sm:$0xf] }
  0x1f   :  { %v405_v21 = vor.u32 %v527_v19, %v404_v18  ;;  %v543_v22 = vld [vmem:[#allocation2 + $0x94] sm:$0xf0]  ;;  %v406_v24 = vld [vmem:[#allocation2 + $0x18] sm:$0xf0]  ;;  %v542_v27 = vld [vmem:[#allocation2 + $0x94] sm:$0xf] }
  0x20   :  { %338 = vmatpush.bf16.msrb.mxu0 %v433_v56  ;;  %351 = vmatpush.bf16.msrb.mxu1 %v497_v60  ;;  %v469_v25 = vor.u32 %v543_v22, %v468_v20  ;;  %v409_v26 = vor.u32 %v526_v23, %v406_v24  ;;  %v470_v28 = vld [vmem:[#allocation2 + $0x98] sm:$0xf0]  ;;  %v396_v30 = vld [vmem:[#allocation2] sm:$0xf]  ;;  %v525_v31 = vld [vmem:[#allocation2 + $0x4] sm:$0xf0] }
  0x21   :  { %313 = vmatpush.bf16.msra.mxu2 %v421_v2  ;;  %326 = vmatpush.bf16.msra.mxu3 %v485_v3  ;;  %v473_v29 = vor.u32 %v542_v27, %v470_v28  ;;  %v460_v32 = vld [vmem:[#allocation2 + $0x80] sm:$0xf]  ;;  %v397_v33 = vor.u32 %v525_v31, %v396_v30  ;;  %v541_v34 = vld [vmem:[#allocation2 + $0x84] sm:$0xf0]  ;;  %v524_v35 = vld [vmem:[#allocation2 + $0x4] sm:$0xf] }
  0x22   :  { %v398_v36 = vld [vmem:[#allocation2 + $0x8] sm:$0xf0]  ;;  %v461_v37 = vor.u32 %v541_v34, %v460_v32  ;;  %v540_v39 = vld [vmem:[#allocation2 + $0x84] sm:$0xf]  ;;  %v363_v63 = vld [vmem:[%s680_s3] sm:$0x3] }
  0x23   :  { %v401_v38 = vor.u32 %v524_v35, %v398_v36  ;;  %v462_v40 = vld [vmem:[#allocation2 + $0x88] sm:$0xf0]  ;;  %v55_v42 = vld [vmem:[#allocation4] ss:$8 sm:$0x3]  ;;  %v365_v6 = vperm.slane %v363_v63, 0 }
  0x24   :  { %339 = vmatpush.bf16.msrb.mxu0 %v425_v4  ;;  %352 = vmatpush.bf16.msrb.mxu1 %v489_v8  ;;  %v465_v41 = vor.u32 %v540_v39, %v462_v40  ;;  %v57_v43 = vperm.slane %v55_v42, 0  ;;  %v58_v44 = vperm.slane %v55_v42, 1  ;;  %v143_v55 = vld [vmem:[#allocation4 + $0x1] ss:$8 sm:$0x3]  ;;  %v366_v7 = vperm.slane %v363_v63, 1 }
  0x25   :  { %314 = vmatpush.bf16.msra.mxu2 %v413_v14  ;;  %327 = vmatpush.bf16.msra.mxu3 %v477_v15  ;;  %v146_v56 = vperm.slane %v143_v55, 1  ;;  %v145_v60 = vperm.slane %v143_v55, 0  ;;  %v374_v14 = vld [vmem:[#allocation4 + $0x2] ss:$0 sm:$0xff] }
  0x28   :  { %340 = vmatpush.bf16.msrb.mxu0 %v417_v16  ;;  %353 = vmatpush.bf16.msrb.mxu1 %v481_v17 }
  0x29   :  { %315 = vmatpush.bf16.msra.mxu2 %v405_v21  ;;  %328 = vmatpush.bf16.msra.mxu3 %v469_v25 }
  0x2c   :  { %341 = vmatpush.bf16.msrb.mxu0 %v409_v26  ;;  %354 = vmatpush.bf16.msrb.mxu1 %v473_v29 }
  0x2d   :  { %316 = vmatpush.bf16.msra.mxu2 %v397_v33  ;;  %329 = vmatpush.bf16.msra.mxu3 %v461_v37 }
  0x30   :  { %342 = vmatpush.bf16.msrb.mxu0 %v401_v38  ;;  %355 = vmatpush.bf16.msrb.mxu1 %v465_v41 }
  0x90   :  { %v89_v45 = vpop.f32.mrf.mxu0  ;;  %v102_v47 = vpop.f32.mrf.mxu1 }
  0x91   :  { %v90_v46 = vadd.f32 %v89_v45, %v57_v43  ;;  %v103_v48 = vadd.f32 %v102_v47, %v58_v44 }
  0x93   :  { %v106_v49 = vmax.f32 %v90_v46, 0.0  ;;  %v107_v50 = vmax.f32 %v103_v48, 0.0 }
  0x95   :  { %v108_v51 = vpack.c.bf16 %v106_v49, %v106_v49  ;;  %v109_v52 = vpack.c.bf16 %v107_v50, %v107_v50 }
  0x97   :  { %317 = vmatmul.bf16.vlgmr.msra.gmra.mxu2 %v108_v51  ;;  %343 = vmatmul.bf16.vlgmr.msrb.gmra.mxu0 %v108_v51 }
  0x98   :  { %330 = vmatmul.bf16.vlgmr.msra.gmra.mxu3 %v109_v52  ;;  %356 = vmatmul.bf16.vlgmr.msrb.gmra.mxu1 %v109_v52  ;;  %v91_v53 = vpop.f32.mrf.mxu0  ;;  %v104_v54 = vpop.f32.mrf.mxu1 }
 0x114   :  { %v344_v57 = vpop.f32.mrf.mxu0 }
 0x115   :  { %v345_v58 = vadd.f32 %v344_v57, %v146_v56  ;;  %v357_v59 = vpop.f32.mrf.mxu1 }
 0x117   :  { %v358_v61 = vadd.f32 %v357_v59, %v345_v58 }
 0x119   :  { %v362_v3 = vmax.f32 %v358_v61, 0.0 }
 0x11a   :  { %v318_v62 = vpop.f32.mrf.mxu2 }
 0x11b   :  { %v319_v0 = vadd.f32 %v318_v62, %v145_v60  ;;  %v331_v1 = vpop.f32.mrf.mxu3  ;;  %v370_v10 = vmul.f32 %v366_v7, %v362_v3 }
 0x11c   :  { %v346_v2 = vpop.f32.mrf.mxu0 }
 0x11d   :  { %v332_v4 = vadd.f32 %v331_v1, %v319_v0  ;;  %v359_v5 = vpop.f32.mrf.mxu1 }
 0x11f   :  { %v361_v8 = vmax.f32 %v332_v4, 0.0 }
 0x121   :  { %v369_v9 = vmul.f32 %v365_v6, %v361_v8 }
 0x122   :  { %v320_v11 = vpop.f32.mrf.mxu2 }
 0x123   :  { %v333_v12 = vpop.f32.mrf.mxu3  ;;  %v371_v13 = vadd.f32 %v370_v10, %v369_v9 }
 0x125   :  { %372 = vadd.xlane.f32.xlu0 %v371_v13 }
 0x198   :  { %v373_v15 = vpop.xlane.xlu0 %372 }
 0x199   :  { %v375_v16 = vadd.f32 %v374_v14, %v373_v15 }
 0x19b   :  { %377 = vst.msk [vmem:[%s682_s5] sm:$0xff] %vm376_vm2, %v375_v16 }
 0x19c   :  { %382 = vsyncpa [#allocation3], 1 }
 0x19d   :  { %383 = vsyncpa [#allocation5], 1 }

</bundles_post_ra>
